<compile_context>
chip_gen: v5e
topology: v5e:2x2
jax: 0.10.0
libtpu: 0.0.40
codegen_flags: <defaults>
</compile_context>

<pallas_src>
import functools

import jax
import jax.numpy as jnp
from jax import lax
from jax.experimental import pallas as pl
from jax.experimental.pallas import tpu as pltpu


def _focal_loss_kernel(x_ref, t_ref, o_ref, acc_ref, *, gamma, alpha_table):
    """One grid step = one (rows, 128) spatial tile of one (batch, split) pair.

    x_ref:   (1, C, rows, 128)  logits tile (VMEM), spatial lane-dense
    t_ref:   (1, 1, rows, 128)  int32 target class (or -1 padding sentinel)
    o_ref:   (1, 8, 128)        f32 per-(batch, split) partial sum (broadcast)
    acc_ref: (rows, 128)        f32 running per-position loss accumulator
    """
    s = pl.program_id(2)
    C = x_ref.shape[1]

    @pl.when(s == 0)
    def _init():
        acc_ref[...] = jnp.zeros_like(acc_ref)

    t = t_ref[0, 0]                                    # (rows, 128) int32

    if C <= 32:
        # Pass 1: running max over classes. Rows are re-read from VMEM
        # (3 vld slots/cycle, cheap); only `m` stays live.
        m = x_ref[0, 0].astype(jnp.float32)
        for c in range(1, C):
            m = jnp.maximum(m, x_ref[0, c].astype(jnp.float32))
        # Pass 2: softmax denominator + gather of target logit and its exp.
        row = x_ref[0, 0].astype(jnp.float32)
        e = jnp.exp(row - m)
        den, xt, et = e, row, e
        for c in range(1, C):
            row = x_ref[0, c].astype(jnp.float32)
            e = jnp.exp(row - m)
            den = den + e
            sel = t == c
            xt = jnp.where(sel, row, xt)
            et = jnp.where(sel, e, et)
    else:
        # Large-C fallback: vectorized class-axis reductions.
        x = x_ref[0].astype(jnp.float32)               # (C, rows, 128)
        m = jnp.max(x, axis=0)
        e = jnp.exp(x - m[None])
        den = jnp.sum(e, axis=0)
        sel = lax.broadcasted_iota(jnp.int32, x.shape, 0) == t[None]
        xt = jnp.sum(jnp.where(sel, x, 0.0), axis=0)
        et = jnp.sum(jnp.where(sel, e, 0.0), axis=0)

    logpt = (xt - m) - jnp.log(den)                    # log_softmax at target
    # pt = exp(logpt) without the extra EUP exp; clamp guards the float-gamma
    # pow-of-negative-base corner when rounding nudges pt above 1.
    pt = jnp.minimum(et / den, 1.0)

    # -alpha.gather(0, target), sign folded into the compile-time constants.
    # Out-of-table targets (incl. the -1 padding sentinel) get weight 0.
    # TODO(synk): PyTorch's gather would raise on out-of-range targets; here
    # they silently contribute zero loss.
    nat = jnp.zeros_like(logpt)
    for c, a in enumerate(alpha_table):
        nat = jnp.where(t == c, jnp.float32(-a), nat)

    # loss = -1 * (1 - pt)**gamma * (logpt * alpha_t)
    acc_ref[...] += (1.0 - pt) ** gamma * (logpt * nat)

    @pl.when(s == pl.num_programs(2) - 1)
    def _finalize():
        # Single cross-lane/sublane reduce per (batch, split) pair.
        o_ref[...] = jnp.sum(acc_ref[...]) * jnp.ones(o_ref.shape, jnp.float32)


def focal_loss(logits, target, *, gamma=2, alpha=0.2, size_average=True,
               block_rows=1024, vmem_budget_bytes=12 * 1024 * 1024):
    """logits: (N, C, H, W) float; target: (N, H, W) int class indices."""
    N, C, H, W = logits.shape
    S = H * W

    # Keep bf16 logits as bf16 (halves HBM traffic); anything else -> f32.
    if logits.dtype not in (jnp.float32, jnp.bfloat16):
        logits = logits.astype(jnp.float32)
    x_item = logits.dtype.itemsize

    # alpha handling mirrors the module: scalar -> [alpha, 1-alpha]; list as-is.
    if isinstance(alpha, (float, int)):
        alpha_table = (float(alpha), float(1.0 - alpha))
    else:
        alpha_table = tuple(float(a) for a in alpha)

    # Split the spatial range across 2 parallel grid chunks when the batch
    # axis alone cannot feed both v7x TensorCores.
    n_par = 2 if N == 1 else 1

    # Row-tile sizing: rows of 128 lanes; budget covers double-buffered x + t
    # blocks plus the accumulator scratch.
    R_min = pl.cdiv(S, 128)
    row_bytes = 2 * (C * 128 * x_item + 128 * 4) + 128 * 4
    ts_rows = min(block_rows, vmem_budget_bytes // row_bytes,
                  pl.cdiv(R_min, n_par))
    ts_rows = max(16, (ts_rows // 16) * 16)     # sublane-tile aligned (f32/bf16)

    n_s = pl.cdiv(R_min, ts_rows * n_par)       # spatial tiles per parallel chunk
    R_pad = n_s * ts_rows * n_par
    S_pad = R_pad * 128

    # NCHW-native: reshape is free; padding (only when S isn't already a
    # multiple of the tile) uses zero logits + a -1 target sentinel, which the
    # kernel maps to zero alpha-weight => exactly zero loss contribution.
    x = logits.reshape(N, C, S)
    t = target.reshape(N, 1, S).astype(jnp.int32)
    if S_pad != S:
        x = jnp.pad(x, ((0, 0), (0, 0), (0, S_pad - S)))
        t = jnp.pad(t, ((0, 0), (0, 0), (0, S_pad - S)), constant_values=-1)
    x = x.reshape(N, C, R_pad, 128)
    t = t.reshape(N, 1, R_pad, 128)

    # Explicit scoped-VMEM limit: safe on v7x (64 MiB physical / 32 MiB scoped
    # default) while still raising v5e's 16 MiB default if tiles grow.
    block_bytes = ts_rows * 128 * (C * x_item + 4)
    working = 2 * block_bytes + ts_rows * 128 * 4
    vmem_limit = min(64 * 1024 * 1024, max(32 * 1024 * 1024, 2 * working))

    kernel = functools.partial(_focal_loss_kernel, gamma=gamma,
                               alpha_table=alpha_table)

    partials = pl.pallas_call(
        kernel,
        out_shape=jax.ShapeDtypeStruct((N * n_par, 8, 128), jnp.float32),
        grid_spec=pltpu.PrefetchScalarGridSpec(
            num_scalar_prefetch=0,
            grid=(N, n_par, n_s),
            in_specs=[
                pl.BlockSpec((1, C, ts_rows, 128),
                             lambda n, p, s: (n, 0, p * n_s + s, 0)),
                pl.BlockSpec((1, 1, ts_rows, 128),
                             lambda n, p, s: (n, 0, p * n_s + s, 0)),
            ],
            out_specs=pl.BlockSpec((1, 8, 128),
                                   lambda n, p, s: (n * n_par + p, 0, 0)),
            scratch_shapes=[pltpu.VMEM((ts_rows, 128), jnp.float32)],
        ),
        compiler_params=pltpu.CompilerParams(
            dimension_semantics=("parallel", "parallel", "arbitrary"),
            vmem_limit_bytes=int(vmem_limit)),
    )(x, t)

    total = jnp.sum(partials[:, 0, 0])
    if size_average:
        return total / jnp.float32(N * S)
    return total


def focal_loss_ref(logits, target, *, gamma=2, alpha=0.2, size_average=True):
    """Plain-JAX reference mirroring the PyTorch forward exactly."""
    N, C, H, W = logits.shape
    x = jnp.transpose(logits, (0, 2, 3, 1)).reshape(-1, C).astype(jnp.float32)
    t = target.reshape(-1).astype(jnp.int32)
    logsm = jax.nn.log_softmax(x, axis=1)
    logpt = jnp.take_along_axis(logsm, t[:, None], axis=1)[:, 0]
    pt = jnp.exp(logpt)
    if isinstance(alpha, (float, int)):
        alpha_vec = jnp.array([alpha, 1.0 - alpha], dtype=jnp.float32)
    else:
        alpha_vec = jnp.array(alpha, dtype=jnp.float32)
    at = alpha_vec[t]
    logpt = logpt * at
    loss = -1.0 * (1.0 - pt) ** gamma * logpt
    return loss.mean() if size_average else loss.sum()


if __name__ == "__main__":
    key = jax.random.PRNGKey(0)
    k1, k2, k3, k4 = jax.random.split(key, 4)

    # Case 1: binary focal loss (scalar alpha -> 2-entry table), mean reduction.
    N, C, H, W = 2, 4, 16, 16
    logits = jax.random.normal(k1, (N, C, H, W), dtype=jnp.float32)
    target = jax.random.randint(k2, (N, H, W), 0, 2, dtype=jnp.int32)
    out = focal_loss(logits, target, gamma=2, alpha=0.2, size_average=True)
    out = jax.block_until_ready(out)
    ref = focal_loss_ref(logits, target, gamma=2, alpha=0.2, size_average=True)
    assert jnp.allclose(out, ref, rtol=1e-5, atol=1e-6), (out, ref)

    # Case 2: list alpha, sum reduction, N=1 (exercises the spatial parallel
    # split) and a non-128-multiple spatial extent (exercises zero-weight
    # padding instead of in-kernel masking).
    N2, C2, H2, W2 = 1, 4, 20, 20
    alpha2 = [0.1, 0.2, 0.3, 0.4]
    logits2 = jax.random.normal(k3, (N2, C2, H2, W2), dtype=jnp.float32)
    target2 = jax.random.randint(k4, (N2, H2, W2), 0, C2, dtype=jnp.int32)
    out2 = focal_loss(logits2, target2, gamma=2, alpha=alpha2,
                      size_average=False)
    out2 = jax.block_until_ready(out2)
    ref2 = focal_loss_ref(logits2, target2, gamma=2, alpha=alpha2,
                          size_average=False)
    assert jnp.allclose(out2, ref2, rtol=1e-5, atol=1e-5), (out2, ref2)

    print("KERNEL_OK")
</pallas_src>

<mosaic_0001>
module attributes {stable_mosaic.version = 11 : i64} {
  func.func @_focal_loss_kernel(%arg0: i32, %arg1: i32, %arg2: i32, %arg3: memref<1x4x16x128xf32, #tpu.memory_space<vmem>>, %arg4: memref<1x1x16x128xi32, #tpu.memory_space<vmem>>, %arg5: memref<1x8x128xf32, #tpu.memory_space<vmem>>, %arg6: memref<16x128xf32, #tpu.memory_space<vmem>>) attributes {dimension_semantics = [#tpu.dimension_semantics<parallel>, #tpu.dimension_semantics<parallel>, #tpu.dimension_semantics<arbitrary>], iteration_bounds = array<i64: 2, 1, 1>, scalar_prefetch = 0 : i64, scratch_operands = 1 : i64, tpu.core_type = #tpu.core_type<tc>, window_params = [{transform_indices = @transform_0, window_bounds = array<i64: 1, 4, 16, 128>}, {transform_indices = @transform_1, window_bounds = array<i64: 1, 1, 16, 128>}, {transform_indices = @transform_2, window_bounds = array<i64: 1, 8, 128>}]} {
    %c0_i32 = arith.constant 0 : i32
    %0 = arith.cmpi eq, %arg2, %c0_i32 : i32
    %1 = arith.extui %0 : i1 to i32
    %c0_i32_0 = arith.constant 0 : i32
    %2 = arith.cmpi ne, %1, %c0_i32_0 : i32
    scf.if %2 {
      %cst_45 = arith.constant 0.000000e+00 : f32
      %73 = vector.broadcast %cst_45 : f32 to vector<16x128xf32>
      %c0_46 = arith.constant 0 : index
      %c0_47 = arith.constant 0 : index
      %74 = vector.load %arg6[%c0_46, %c0_47] : memref<16x128xf32, #tpu.memory_space<vmem>>, vector<16x128xf32>
      tpu.vector_store %arg6[%c0_46, %c0_47], %73 {strides = array<i32>} : memref<16x128xf32, #tpu.memory_space<vmem>>, vector<16x128xf32>,
    } else {
    }
    %c0 = arith.constant 0 : index
    %c0_1 = arith.constant 0 : index
    %c0_2 = arith.constant 0 : index
    %c0_3 = arith.constant 0 : index
    %3 = vector.load %arg4[%c0, %c0_1, %c0_2, %c0_3] : memref<1x1x16x128xi32, #tpu.memory_space<vmem>>, vector<1x1x16x128xi32>
    %4 = vector.shape_cast %3 : vector<1x1x16x128xi32> to vector<16x128xi32>
    %c0_4 = arith.constant 0 : index
    %c0_5 = arith.constant 0 : index
    %c0_6 = arith.constant 0 : index
    %c0_7 = arith.constant 0 : index
    %5 = vector.load %arg3[%c0_4, %c0_5, %c0_6, %c0_7] : memref<1x4x16x128xf32, #tpu.memory_space<vmem>>, vector<1x1x16x128xf32>
    %6 = vector.shape_cast %5 : vector<1x1x16x128xf32> to vector<16x128xf32>
    %c0_8 = arith.constant 0 : index
    %c1 = arith.constant 1 : index
    %c0_9 = arith.constant 0 : index
    %c0_10 = arith.constant 0 : index
    %7 = vector.load %arg3[%c0_8, %c1, %c0_9, %c0_10] : memref<1x4x16x128xf32, #tpu.memory_space<vmem>>, vector<1x1x16x128xf32>
    %8 = vector.shape_cast %7 : vector<1x1x16x128xf32> to vector<16x128xf32>
    %9 = arith.maximumf %6, %8 : vector<16x128xf32>
    %c0_11 = arith.constant 0 : index
    %c2 = arith.constant 2 : index
    %c0_12 = arith.constant 0 : index
    %c0_13 = arith.constant 0 : index
    %10 = vector.load %arg3[%c0_11, %c2, %c0_12, %c0_13] : memref<1x4x16x128xf32, #tpu.memory_space<vmem>>, vector<1x1x16x128xf32>
    %11 = vector.shape_cast %10 : vector<1x1x16x128xf32> to vector<16x128xf32>
    %12 = arith.maximumf %9, %11 : vector<16x128xf32>
    %c0_14 = arith.constant 0 : index
    %c3 = arith.constant 3 : index
    %c0_15 = arith.constant 0 : index
    %c0_16 = arith.constant 0 : index
    %13 = vector.load %arg3[%c0_14, %c3, %c0_15, %c0_16] : memref<1x4x16x128xf32, #tpu.memory_space<vmem>>, vector<1x1x16x128xf32>
    %14 = vector.shape_cast %13 : vector<1x1x16x128xf32> to vector<16x128xf32>
    %15 = arith.maximumf %12, %14 : vector<16x128xf32>
    %c0_17 = arith.constant 0 : index
    %c0_18 = arith.constant 0 : index
    %c0_19 = arith.constant 0 : index
    %c0_20 = arith.constant 0 : index
    %16 = vector.load %arg3[%c0_17, %c0_18, %c0_19, %c0_20] : memref<1x4x16x128xf32, #tpu.memory_space<vmem>>, vector<1x1x16x128xf32>
    %17 = vector.shape_cast %16 : vector<1x1x16x128xf32> to vector<16x128xf32>
    %18 = arith.subf %17, %15 : vector<16x128xf32>
    %19 = math.exp %18 : vector<16x128xf32>
    %c0_21 = arith.constant 0 : index
    %c1_22 = arith.constant 1 : index
    %c0_23 = arith.constant 0 : index
    %c0_24 = arith.constant 0 : index
    %20 = vector.load %arg3[%c0_21, %c1_22, %c0_23, %c0_24] : memref<1x4x16x128xf32, #tpu.memory_space<vmem>>, vector<1x1x16x128xf32>
    %21 = vector.shape_cast %20 : vector<1x1x16x128xf32> to vector<16x128xf32>
    %22 = arith.subf %21, %15 : vector<16x128xf32>
    %23 = math.exp %22 : vector<16x128xf32>
    %24 = arith.addf %19, %23 : vector<16x128xf32>
    %c1_i32 = arith.constant 1 : i32
    %25 = vector.broadcast %c1_i32 : i32 to vector<16x128xi32>
    %26 = arith.cmpi eq, %4, %25 : vector<16x128xi32>
    %27 = arith.select %26, %21, %17 : vector<16x128xi1>, vector<16x128xf32>
    %28 = arith.select %26, %23, %19 : vector<16x128xi1>, vector<16x128xf32>
    %c0_25 = arith.constant 0 : index
    %c2_26 = arith.constant 2 : index
    %c0_27 = arith.constant 0 : index
    %c0_28 = arith.constant 0 : index
    %29 = vector.load %arg3[%c0_25, %c2_26, %c0_27, %c0_28] : memref<1x4x16x128xf32, #tpu.memory_space<vmem>>, vector<1x1x16x128xf32>
    %30 = vector.shape_cast %29 : vector<1x1x16x128xf32> to vector<16x128xf32>
    %31 = arith.subf %30, %15 : vector<16x128xf32>
    %32 = math.exp %31 : vector<16x128xf32>
    %33 = arith.addf %24, %32 : vector<16x128xf32>
    %c2_i32 = arith.constant 2 : i32
    %34 = vector.broadcast %c2_i32 : i32 to vector<16x128xi32>
    %35 = arith.cmpi eq, %4, %34 : vector<16x128xi32>
    %36 = arith.select %35, %30, %27 : vector<16x128xi1>, vector<16x128xf32>
    %37 = arith.select %35, %32, %28 : vector<16x128xi1>, vector<16x128xf32>
    %c0_29 = arith.constant 0 : index
    %c3_30 = arith.constant 3 : index
    %c0_31 = arith.constant 0 : index
    %c0_32 = arith.constant 0 : index
    %38 = vector.load %arg3[%c0_29, %c3_30, %c0_31, %c0_32] : memref<1x4x16x128xf32, #tpu.memory_space<vmem>>, vector<1x1x16x128xf32>
    %39 = vector.shape_cast %38 : vector<1x1x16x128xf32> to vector<16x128xf32>
    %40 = arith.subf %39, %15 : vector<16x128xf32>
    %41 = math.exp %40 : vector<16x128xf32>
    %42 = arith.addf %33, %41 : vector<16x128xf32>
    %c3_i32 = arith.constant 3 : i32
    %43 = vector.broadcast %c3_i32 : i32 to vector<16x128xi32>
    %44 = arith.cmpi eq, %4, %43 : vector<16x128xi32>
    %45 = arith.select %44, %39, %36 : vector<16x128xi1>, vector<16x128xf32>
    %46 = arith.select %44, %41, %37 : vector<16x128xi1>, vector<16x128xf32>
    %47 = arith.subf %45, %15 : vector<16x128xf32>
    %48 = math.log %42 : vector<16x128xf32>
    %49 = arith.subf %47, %48 : vector<16x128xf32>
    %50 = arith.divf %46, %42 : vector<16x128xf32>
    %cst = arith.constant 1.000000e+00 : f32
    %51 = vector.broadcast %cst : f32 to vector<16x128xf32>
    %52 = arith.minimumf %50, %51 : vector<16x128xf32>
    %cst_33 = arith.constant 0.000000e+00 : f32
    %53 = vector.broadcast %cst_33 : f32 to vector<16x128xf32>
    %c0_i32_34 = arith.constant 0 : i32
    %54 = vector.broadcast %c0_i32_34 : i32 to vector<16x128xi32>
    %55 = arith.cmpi eq, %4, %54 : vector<16x128xi32>
    %cst_35 = arith.constant -2.000000e-01 : f32
    %56 = vector.broadcast %cst_35 : f32 to vector<16x128xf32>
    %57 = arith.select %55, %56, %53 : vector<16x128xi1>, vector<16x128xf32>
    %c1_i32_36 = arith.constant 1 : i32
    %58 = vector.broadcast %c1_i32_36 : i32 to vector<16x128xi32>
    %59 = arith.cmpi eq, %4, %58 : vector<16x128xi32>
    %cst_37 = arith.constant -8.000000e-01 : f32
    %60 = vector.broadcast %cst_37 : f32 to vector<16x128xf32>
    %61 = arith.select %59, %60, %57 : vector<16x128xi1>, vector<16x128xf32>
    %c0_38 = arith.constant 0 : index
    %c0_39 = arith.constant 0 : index
    %62 = vector.load %arg6[%c0_38, %c0_39] : memref<16x128xf32, #tpu.memory_space<vmem>>, vector<16x128xf32>
    %cst_40 = arith.constant 1.000000e+00 : f32
    %63 = vector.broadcast %cst_40 : f32 to vector<16x128xf32>
    %64 = arith.subf %63, %52 : vector<16x128xf32>
    %65 = arith.mulf %64, %64 : vector<16x128xf32>
    %66 = arith.mulf %49, %61 : vector<16x128xf32>
    %67 = arith.mulf %65, %66 : vector<16x128xf32>
    %68 = arith.addf %62, %67 : vector<16x128xf32>
    %c0_41 = arith.constant 0 : index
    %c0_42 = arith.constant 0 : index
    %69 = vector.load %arg6[%c0_41, %c0_42] : memref<16x128xf32, #tpu.memory_space<vmem>>, vector<16x128xf32>
    tpu.vector_store %arg6[%c0_41, %c0_42], %68 {strides = array<i32>} : memref<16x128xf32, #tpu.memory_space<vmem>>, vector<16x128xf32>,
    %c0_i32_43 = arith.constant 0 : i32
    %70 = arith.cmpi eq, %arg2, %c0_i32_43 : i32
    %71 = arith.extui %70 : i1 to i32
    %c0_i32_44 = arith.constant 0 : i32
    %72 = arith.cmpi ne, %71, %c0_i32_44 : i32
    scf.if %72 {
      %c0_45 = arith.constant 0 : index
      %c0_46 = arith.constant 0 : index
      %73 = vector.load %arg6[%c0_45, %c0_46] : memref<16x128xf32, #tpu.memory_space<vmem>>, vector<16x128xf32>
      %74 = vector.shape_cast %73 : vector<16x128xf32> to vector<1x16x128xf32>
      %cst_47 = arith.constant dense<0.000000e+00> : vector<1xf32>
      %75 = vector.multi_reduction <add>, %74, %cst_47 [1, 2] : vector<1x16x128xf32> to vector<1xf32>
      %76 = vector.shape_cast %75 : vector<1xf32> to vector<1x1x1xf32>
      %77 = vector.extract %76[0, 0, 0] : f32 from vector<1x1x1xf32>
      %cst_48 = arith.constant 1.000000e+00 : f32
      %78 = vector.broadcast %cst_48 : f32 to vector<1x8x128xf32>
      %79 = vector.broadcast %77 : f32 to vector<1x8x128xf32>
      %80 = arith.mulf %79, %78 : vector<1x8x128xf32>
      %c0_49 = arith.constant 0 : index
      %c0_50 = arith.constant 0 : index
      %c0_51 = arith.constant 0 : index
      %81 = vector.load %arg5[%c0_49, %c0_50, %c0_51] : memref<1x8x128xf32, #tpu.memory_space<vmem>>, vector<1x8x128xf32>
      tpu.vector_store %arg5[%c0_49, %c0_50, %c0_51], %80 {strides = array<i32>} : memref<1x8x128xf32, #tpu.memory_space<vmem>>, vector<1x8x128xf32>,
    } else {
    }
    return
  }
  func.func @transform_0(%arg0: i32, %arg1: i32, %arg2: i32) -> (i32, i32, i32, i32) {
    %c1_i32 = arith.constant 1 : i32
    %0 = arith.muli %arg1, %c1_i32 : i32
    %1 = arith.addi %0, %arg2 : i32
    %c0_i32 = arith.constant 0 : i32
    %c0_i32_0 = arith.constant 0 : i32
    %c0_i32_1 = arith.constant 0 : i32
    return %arg0, %c0_i32, %1, %c0_i32_0 : i32, i32, i32, i32
  }
  func.func @transform_1(%arg0: i32, %arg1: i32, %arg2: i32) -> (i32, i32, i32, i32) {
    %c1_i32 = arith.constant 1 : i32
    %0 = arith.muli %arg1, %c1_i32 : i32
    %1 = arith.addi %0, %arg2 : i32
    %c0_i32 = arith.constant 0 : i32
    %c0_i32_0 = arith.constant 0 : i32
    %c0_i32_1 = arith.constant 0 : i32
    return %arg0, %c0_i32, %1, %c0_i32_0 : i32, i32, i32, i32
  }
  func.func @transform_2(%arg0: i32, %arg1: i32, %arg2: i32) -> (i32, i32, i32) {
    %c1_i32 = arith.constant 1 : i32
    %0 = arith.muli %arg0, %c1_i32 : i32
    %1 = arith.addi %0, %arg1 : i32
    %c0_i32 = arith.constant 0 : i32
    %c0_i32_0 = arith.constant 0 : i32
    %c0_i32_1 = arith.constant 0 : i32
    return %1, %c0_i32, %c0_i32_0 : i32, i32, i32
  }
}

</mosaic_0001>

<bundles_post_ra>
// kernel: tpu_custom_call.1
= control target key start
LH: loop header
LB: loop body
LE: loop exit
PB: predicated region body
PF: predicated region fallthrough
CT: control target
= control target key end

     0   :  { %7 = vsyncpa [#allocation4], 0  ;;  %s1035_s0 = inlined_call_operand.hbm [shape: f32[2,4,16,128], index: 0, kind: input, shape index: {}]   ;;  %s1036_s1 = inlined_call_operand.hbm [shape: s32[2,1,16,128], index: 1, kind: input, shape index: {}]   ;;  %s1037_s2 = inlined_call_operand.hbm [shape: f32[2,8,128], index: 2, kind: output, shape index: {}]  }
   0x1   :  { %9 = vsyncpa [#allocation4 + $0x1], 0 }
   0x2   :  { %10 = vsyncpa [#allocation7], 0 }
   0x3   :  { %12 = vsyncpa [#allocation7 + $0x1], 0 }
   0x4   :  { %13 = vsyncpa [#allocation5], 0 }
   0x5   :  { %15 = vsyncpa [#allocation5 + $0x1], 0  ;;  %s814_s9 = smov 0   ;;  %s816_s10 = smov 0  }
   0x6   :  { %s818_s11 = smov 0   ;;  %s820_s12 = smov 0  }
   0x7   :  { %s822_s13 = smov 0   ;;  %s824_s14 = smov 0  }
   0x8 LB: > { %s526_s15 = sadd.s32 4294967295, %s794_s14   ;;  %s527_s16 = sadd.s32 4294967294, %s794_s14   ;;  %s794_s14 = sphi %s824_s14, %s21_s14   ;;  %s790_s13 = sphi %s822_s13, %s1051_s13   ;;  %s786_s12 = sphi %s820_s12, %s1050_s12   ;;  %s782_s11 = sphi %s818_s11, %s1049_s11   ;;  %s778_s10 = sphi %s816_s10, %s1048_s10   ;;  %s774_s9 = sphi %s814_s9, %s1047_s9  }
   0x9   : > { %s40_s17 = sadd.s32 1, %s790_s13  ;;  %s51_s18 = sadd.s32 1, %s782_s11 }
   0xa   : > { %p42_p0 = scmp.ge.s32.totalorder %s40_s17, 2  ;;  %p58_p1 = scmp.ne.s32.totalorder %s782_s11, %s778_s10 }
   0xb   : > { %p59_p2 = scmp.eq.s32.totalorder %s794_s14, 0  ;;  %p64_p3 = scmp.ne.s32.totalorder %s778_s10, %s774_s9 }
   0xc   : > { %s1053_s17 = smov (%p42_p0, %s40_s17), 0  ;;  %p65_p5 = scmp.eq.s32.totalorder %s526_s15, 0 }
   0xd   : > { %p855_p4 = por %p59_p2, %p58_p1  ;;  %s46_s20 = ssub.s32 %s790_s13, %s1053_s17 }
   0xe   : > { %p120_p6 = scmp.eq.s32.totalorder %s526_s15, 1  ;;  %p49_p7 = scmp.eq.s32.totalorder %s46_s20, 0 }
   0xf   : > { %p861_p8 = por %p65_p5, %p64_p3  ;;  %p126_p10 = scmp.eq.s32.totalorder %s527_s16, 1 }
  0x10   : > { %p865_p9 = por %p120_p6, %p58_p1  ;;  %p529_p12 = scmp.ge.s32.totalorder %s794_s14, 2 }
  0x11   : > { %s870_s23 = scalar_select %p49_p7, %s782_s11, %s51_s18  }
  0x12   : > { %p872_p11 = por %p126_p10, %p64_p3  ;;  %p571_p13 = scmp.lt.s32.totalorder %s794_s14, 2 }
  0x13   : > { %s879_s25 = sand.u32 1, %s782_s11   ;;  %s550_s27 = sshll.u32 %s790_s13, 6 }
  0x14   : > { %s530_s26 = sshll.u32 %s879_s25, 6  ;;  %s158_s30 = scalar_lea.hbm %s1035_s0, %s550_s27 }
  0x15   : > { %s150_s3 = scalar_lea.vmem [#allocation3], %s530_s26  ;;  %s159_s5 = sshll.u32 %s158_s30, 4  ;;  %s160_s5 = int_to_ptr.hbm [resolvable:$true] %s159_s5 }
  0x16   : > { %s161_s4 = sshll.u32 %s150_s3, 4  ;;  %p888_p0 = pnand %p571_p13, %p855_p4  ;;  %s162_s4 = int_to_ptr.vmem [resolvable:$true] %s161_s4 }
  0x17   : > { %p536_p1 = scmp.ge.s32.totalorder %s794_s14, 1  ;;  %s147_s7 = scalar_lea.sflag [#allocation4], %s879_s25 }
  0x18   : > { %s796_s8 = smov 128   ;;  %s797_s15 = smov 8  }
  0x19   : > { %563 = dma.hbm_to_vmem [thread:$0]  (!%p888_p0), %s160_s5, 1024, %s162_s4, %s147_s7, %s796_s8, %s796_s8, %s797_s15  }
  0x1a   : > { %p194_p2 = scmp.lt.s32.totalorder %s794_s14, 3  ;;  %s533_s16 = sshll.u32 %s879_s25, 4 }
  0x1b   : > { %s551_s18 = sshll.u32 %s790_s13, 4  ;;  %s175_s27 = scalar_lea.vmem [#allocation6], %s533_s16 }
  0x1c   : > { %p195_p3 = pnand %p536_p1, %p194_p2  ;;  %s183_s19 = scalar_lea.hbm %s1036_s1, %s551_s18 }
  0x1d   : > { %s186_s28 = sshll.u32 %s175_s27, 4  ;;  %s184_s29 = sshll.u32 %s183_s19, 4  ;;  %s187_s28 = int_to_ptr.vmem [resolvable:$true] %s186_s28  ;;  %s185_s29 = int_to_ptr.hbm [resolvable:$true] %s184_s29 }
  0x1e   : > { %s172_s30 = scalar_lea.sflag [#allocation7], %s879_s25  ;;  %198 = sbr.rel (%p195_p3) target bundleno = 278 (0x116), region = 28 }
  0x1f   : > { %566 = dma.hbm_to_vmem [thread:$0]  (!%p888_p0), %s185_s29, 256, %s187_s28, %s172_s30, %s796_s8, %s796_s8, %s797_s15  }
  0x20   : > { %s906_s3 = sand.u32 (!%p195_p3), 1, %s778_s10  }
  0x21   : > { %s537_s4 = sshll.u32 (!%p195_p3), %s906_s3, 6  ;;  %s201_s5 = scalar_lea.sflag (!%p195_p3), [#allocation4], %s906_s3 }
  0x22   : > { %s204_s7 = scalar_lea.vmem (!%p195_p3), [#allocation3], %s537_s4 }
  0x23   : > { %761 = dma.done.wait (%p861_p8), %s201_s5, 1024  }
  0x24   : > { %763 = vsyncadd (%p861_p8), %s201_s5, 4294966272  ;;  %s538_s25 = sshll.u32 %s906_s3, 4  ;;  %s211_s6 = scalar_lea.sflag [#allocation7], %s906_s3 }
  0x25   : > { %s916_s8 = scalar_lea.vmem [#allocation6], %s538_s25 }
  0x26   : > { %765 = dma.done.wait (%p861_p8), %s211_s6, 256  }
  0x27   : > { %767 = vsyncadd (%p861_p8), %s211_s6, 4294967040  ;;  %v254_v0 = vld [vmem:[%s204_s7] sm:$0xff]  ;;  %v255_v1 = vld [vmem:[%s204_s7 + $0x8] sm:$0xff]  ;;  %s539_s21 = sshll.u32 %s906_s3, 3  ;;  %s547_s15 = sshll.u32 %s786_s12, 3 }
  0x28   : > { %v540_v2 = vld [vmem:[%s204_s7 + $0x10] sm:$0xff]  ;;  %v541_v3 = vld [vmem:[%s204_s7 + $0x18] sm:$0xff]  ;;  %v542_v6 = vld [vmem:[%s204_s7 + $0x20] sm:$0xff]  ;;  %s408_s20 = scalar_lea.hbm %s1037_s2, %s547_s15  ;;  %s240_s26 = scalar_lea.vmem [#allocation8], %s539_s21 }
  0x29   : > { %v259_v4 = vmax.f32 %v254_v0, %v540_v2  ;;  %v260_v5 = vmax.f32 %v255_v1, %v541_v3  ;;  %v543_v7 = vld [vmem:[%s204_s7 + $0x28] sm:$0xff]  ;;  %v544_v8 = vld [vmem:[%s204_s7 + $0x30] sm:$0xff]  ;;  %v545_v9 = vld [vmem:[%s204_s7 + $0x38] sm:$0xff]  ;;  %s410_s19 = sshll.u32 %s240_s26, 4  ;;  %s412_s27 = sshll.u32 %s408_s20, 4  ;;  %s411_s19 = int_to_ptr.vmem [resolvable:$true] %s410_s19  ;;  %s413_s27 = int_to_ptr.hbm [resolvable:$true] %s412_s27 }
  0x2a   : > { %v935_v38 = vld [vmem:[%s916_s8] sm:$0xff]  ;;  %v938_v39 = vld [vmem:[%s916_s8 + $0x8] sm:$0xff]  ;;  %s397_s29 = scalar_lea.sflag [#allocation5], %s906_s3  ;;  %s722_s30 = sshra.s32 %s413_s27, 4  ;;  %s723_s30 = int_to_ptr.hbm [resolvable:$true] %s722_s30 }
  0x2b   : > { %v264_v10 = vmax.f32 %v259_v4, %v542_v6  ;;  %v265_v11 = vmax.f32 %v260_v5, %v543_v7  ;;  %vm285_vm0 = vcmp.eq.s32.totalorder %v935_v38, 1  ;;  %vm286_vm1 = vcmp.eq.s32.totalorder %v938_v39, 1  ;;  %s724_s4 = scalar_lea.hbm %s723_s30, 8  ;;  %s728_s7 = scalar_lea.hbm %s1037_s2, 16 }
  0x2c   : > { %v287_v46 = vsel %vm285_vm0, %v540_v2, %v254_v0  ;;  %v288_v47 = vsel %vm286_vm1, %v541_v3, %v255_v1  ;;  %vm299_vm2 = vcmp.eq.s32.totalorder %v935_v38, 2  ;;  %vm300_vm3 = vcmp.eq.s32.totalorder %v938_v39, 2  ;;  %p725_p4 = scmp.ne.s32.totalorder %s723_s30, %s724_s4  ;;  %p729_p7 = scmp.lt.s32.totalorder %s723_s30, %s1037_s2 }
  0x2d   : > { %v922_v12 = vmax.f32 %v264_v10, %v544_v8  ;;  %v924_v13 = vmax.f32 %v265_v11, %v545_v9  ;;  %v301_v48 = vsel %vm299_vm2, %v542_v6, %v287_v46  ;;  %v302_v49 = vsel %vm300_vm3, %v543_v7, %v288_v47  ;;  %p730_p8 = scmp.lt.s32.totalorder %s728_s7, %s724_s4 }
  0x2e   : > { %vm313_vm4 = vcmp.eq.s32.totalorder %v935_v38, 3  ;;  %vm314_vm5 = vcmp.eq.s32.totalorder %v938_v39, 3  ;;  %vm359_vm10 = vcmp.eq.s32.totalorder %v935_v38, 0  ;;  %vm360_vm11 = vcmp.eq.s32.totalorder %v938_v39, 0  ;;  %p726_p5 = pnand %p725_p4, %p865_p9 }
  0x2f   : > { %v271_v14 = vsub.f32 %v254_v0, %v922_v12  ;;  %v272_v15 = vsub.f32 %v255_v1, %v924_v13  ;;  %v277_v16 = vsub.f32 %v540_v2, %v922_v12  ;;  %v278_v17 = vsub.f32 %v541_v3, %v924_v13  ;;  %p731_p10 = por %p730_p8, %p729_p7 }
  0x30   : > { %v291_v18 = vsub.f32 %v542_v6, %v922_v12  ;;  %v292_v19 = vsub.f32 %v543_v7, %v924_v13  ;;  %v305_v23 = vsub.f32 %v544_v8, %v922_v12  ;;  %v306_v25 = vsub.f32 %v545_v9, %v924_v13  ;;  %p727_p6 = pneg %p726_p5 }
  0x31   : > { %v273_v20 = vmul.f32 1.442695, %v271_v14  ;;  %v275_v21 = vmul.f32 1.442695, %v272_v15  ;;  %v279_v22 = vmul.f32 1.442695, %v277_v16  ;;  %v315_v50 = vsel %vm313_vm4, %v544_v8, %v301_v48 }
  0x32   : > { %v281_v24 = vmul.f32 1.442695, %v278_v17  ;;  %v293_v26 = vmul.f32 1.442695, %v291_v18  ;;  %v295_v27 = vmul.f32 1.442695, %v292_v19  ;;  %v316_v51 = vsel %vm314_vm5, %v545_v9, %v302_v49  ;;  %p732_p13 = pnand %p731_p10, %p727_p6 }
  0x33   : > { %624 = vpow2.f32 %v273_v20  ;;  %v307_v28 = vmul.f32 1.442695, %v305_v23  ;;  %v309_v29 = vmul.f32 1.442695, %v306_v25  ;;  %v319_v55 = vsub.f32 %v315_v50, %v922_v12 }
  0x34   : > { %626 = vpow2.f32 %v275_v21  ;;  %v320_v56 = vsub.f32 %v316_v51, %v924_v13  ;;  %v798_v19 = vmov 0.0  }
  0x35   : > { %628 = vpow2.f32 %v279_v22  ;;  %v361_v20 = vsel %vm359_vm10, -0.2, %v798_v19  ;;  %v362_v23 = vsel %vm360_vm11, -0.2, %v798_v19 }
  0x36   : > { %630 = vpow2.f32 %v281_v24 }
  0x37   : > { %632 = vpow2.f32 %v293_v26 }
  0x38   : > { %634 = vpow2.f32 %v295_v27 }
  0x39   : > { %v625_v30 = vpop.eup %624  ;;  %636 = vpow2.f32 %v307_v28 }
  0x3a   : > { %v627_v31 = vpop.eup %626  ;;  %638 = vpow2.f32 %v309_v29  ;;  %v363_v29 = vsel %vm285_vm0, -0.8, %v361_v20 }
  0x3b   : > { %v629_v32 = vpop.eup %628 }
  0x3c   : > { %v631_v33 = vpop.eup %630  ;;  %v283_v34 = vadd.f32 %v629_v32, %v625_v30  ;;  %v289_v54 = vsel %vm285_vm0, %v629_v32, %v625_v30 }
  0x3d   : > { %v633_v35 = vpop.eup %632  ;;  %v284_v36 = vadd.f32 %v631_v33, %v627_v31  ;;  %v290_v58 = vsel %vm286_vm1, %v631_v33, %v627_v31  ;;  %v364_v31 = vsel %vm286_vm1, -0.8, %v362_v23 }
  0x3e   : > { %v635_v37 = vpop.eup %634  ;;  %v297_v40 = vadd.f32 %v633_v35, %v283_v34  ;;  %v303_v4 = vsel %vm299_vm2, %v633_v35, %v289_v54 }
  0x3f   : > { %v637_v41 = vpop.eup %636  ;;  %v298_v42 = vadd.f32 %v635_v37, %v284_v36  ;;  %v304_v6 = vsel %vm300_vm3, %v635_v37, %v290_v58 }
  0x40   : > { %v639_v43 = vpop.eup %638  ;;  %v311_v44 = vadd.f32 %v637_v41, %v297_v40  ;;  %v317_v14 = vsel %vm313_vm4, %v637_v41, %v303_v4 }
  0x41   : > { %v312_v45 = vadd.f32 %v639_v43, %v298_v42  ;;  %v318_v17 = vsel %vm314_vm5, %v639_v43, %v304_v6 }
  0x42   : > { %640 = vrcp.f32 %v311_v44  ;;  %vm332_vm6 = vweird.f32 %v311_v44  ;;  %v338_v59 = vand.u32 2147483648, %v311_v44  ;;  %v336_v62 = vand.u32 2147483647, %v311_v44 }
  0x43   : > { %642 = vrcp.f32 %v312_v45  ;;  %v353_v63 = vand.u32 2147483648, %v312_v45  ;;  %vm347_vm8 = vweird.f32 %v312_v45  ;;  %v351_v2 = vand.u32 2147483647, %v312_v45 }
  0x44   : > { %644 = vlog2.f32 %v311_v44  ;;  %v339_v8 = vor.u32 1.1754944e-38, %v338_v59  ;;  %vm337_vm13 = vcmp.eq.f32.partialorder %v336_v62, 8.507059e+37 }
  0x45   : > { %646 = vlog2.f32 %v312_v45  ;;  %v354_v13 = vor.u32 1.1754944e-38, %v353_v63  ;;  %vm352_vm15 = vcmp.eq.f32.partialorder %v351_v2, 8.507059e+37 }
  0x48   : > { %v641_v52 = vpop.eup %640 }
  0x49   : > { %v643_v53 = vpop.eup %642  ;;  %v328_v57 = vmul.f32 %v641_v52, %v311_v44  ;;  %vm333_vm7 = vweird.f32 %v641_v52 }
  0x4a   : > { %v343_v60 = vmul.f32 %v643_v53, %v312_v45  ;;  %v645_v0 = vpop.eup %644  ;;  %vm348_vm9 = vweird.f32 %v643_v53  ;;  %vm971_vm12 = vmor %vm332_vm6, %vm333_vm7 }
  0x4b   : > { %v329_v61 = vsub.f32 1.0, %v328_v57  ;;  %v647_v3 = vpop.eup %646  ;;  %v322_v10 = vmul.f32 0.6931472, %v645_v0  ;;  %vm976_vm14 = vmor %vm347_vm8, %vm348_vm9 }
  0x4c   : > { %v344_v1 = vsub.f32 1.0, %v343_v60  ;;  %v324_v15 = vmul.f32 0.6931472, %v647_v3 }
  0x4d   : > { %v330_v5 = vmul.f32 %v641_v52, %v329_v61  ;;  %v325_v24 = vsub.f32 %v319_v55, %v322_v10 }
  0x4e   : > { %v345_v9 = vmul.f32 %v643_v53, %v344_v1  ;;  %v326_v27 = vsub.f32 %v320_v56, %v324_v15 }
  0x4f   : > { %v331_v11 = vadd.f32 %v641_v52, %v330_v5  ;;  %v371_v34 = vmul.f32 %v363_v29, %v325_v24 }
  0x50   : > { %v346_v16 = vadd.f32 %v643_v53, %v345_v9  ;;  %v372_v36 = vmul.f32 %v364_v31, %v326_v27 }
  0x51   : > { %v335_v18 = vsel %vm971_vm12, %v641_v52, %v331_v11 }
  0x52   : > { %v340_v21 = vsel %vm337_vm13, %v339_v8, %v335_v18  ;;  %v350_v22 = vsel %vm976_vm14, %v643_v53, %v346_v16 }
  0x53   : > { %v341_v25 = vmul.f32 %v340_v21, %v317_v14  ;;  %v355_v26 = vsel %vm352_vm15, %v354_v13, %v350_v22 }
  0x54   : > { %v356_v28 = vmul.f32 %v355_v26, %v318_v17 }
  0x55   : > { %v357_v30 = vmin.f32 %v341_v25, 1.0 }
  0x56   : > { %v358_v32 = vmin.f32 %v356_v28, 1.0 }
  0x57   : > { %v367_v33 = vsub.f32 1.0, %v357_v30 }
  0x58   : > { %v368_v35 = vsub.f32 1.0, %v358_v32 }
  0x59   : > { %v369_v37 = vmul.f32 %v367_v33, %v367_v33 }
  0x5a   : > { %v370_v40 = vmul.f32 %v368_v35, %v368_v35 }
  0x5b   : > { %v373_v41 = vmul.f32 %v371_v34, %v369_v37 }
  0x5c   : > { %v374_v42 = vmul.f32 %v372_v36, %v370_v40 }
  0x5e   : > { %v384_v43 = vadd.f32 %v374_v42, %v373_v41 }
  0x60   : > { %385 = vadd.xlane.f32.xlu0 %v384_v43 }
  0xd3   : > { %v386_v44 = vpop.xlane.xlu0 %385 }
  0xd4   : > { %v387_v38 = vrot.slane %v386_v44, 4 }
  0xd6   : > { %v388_v45 = vadd.f32 %v387_v38, %v386_v44 }
  0xd8   : > { %v389_v46 = vrot.slane %v388_v45, 2 }
  0xda   : > { %v390_v39 = vadd.f32 %v389_v46, %v388_v45 }
  0xdc   : > { %v391_v47 = vrot.slane %v390_v39, 1 }
  0xde   : > { %v392_v48 = vadd.f32 %v391_v47, %v390_v39 }
  0xe0   : > { %552 = vpush %v392_v48 }
 0x111   : > { %s553_s28 = spop %552 }
 0x112   : > { %v394_v49 = vstv %s553_s28 }
 0x113   : > { %395 = vst [vmem:[%s240_s26] sm:$0xff] %v394_v49 }
 0x114   : > { %735 = shalt.err (!%p732_p13)
}
 0x115   : > { %558 = dma.vmem_to_hbm [thread:$0]  (%p865_p9), %s411_s19, 128, %s413_s27, %s397_s29  }
 0x116 PF: > { %s424_s3 = sand.u32 1, %s774_s9   ;;  %p568_p0 = pnand %p529_p12, %p872_p11 }
 0x117   : > { %s425_s8 = scalar_lea.sflag [#allocation5], %s424_s3 }
 0x118   : > { %p569_p1 = pneg %p568_p0 }
 0x11a   : > { %769 = dma.done.wait (%p569_p1), %s425_s8, 128  }
 0x11b   : > { %771 = vsyncadd (%p569_p1), %s425_s8, 4294967168  ;;  %s21_s14 = sadd.s32 1, %s794_s14   ;;  %s1047_s9 = smov %s778_s10 }
 0x11c   : > { %p18_p2 = scmp.ge.s32.totalorder %s21_s14, 4   ;;  %s1048_s10 = smov %s782_s11 }
 0x11d   : > { %s1049_s11 = smov %s870_s23  ;;  %s1050_s12 = smov %s790_s13 }
 0x11e   : > { %s1051_s13 = smov %s1053_s17  ;;  %20 = sbr.rel (!%p18_p2) target bundleno = 8 (0x8), region = 97 }
 0x123   :  { %431 = vsyncpa [#allocation4], 1 }
 0x124   :  { %433 = vsyncpa [#allocation4 + $0x1], 1 }
 0x125   :  { %434 = vsyncpa [#allocation7], 1 }
 0x126   :  { %436 = vsyncpa [#allocation7 + $0x1], 1 }
 0x127   :  { %437 = vsyncpa [#allocation5], 1 }
 0x128   :  { %439 = vsyncpa [#allocation5 + $0x1], 1 }

</bundles_post_ra>
